<compile_context>
chip_gen: v6e
topology: v6e:2x2x1
jax: 0.10.0
libtpu: 0.0.40
codegen_flags: <defaults>
</compile_context>

<pallas_src>
import functools
import math

import jax
import jax.numpy as jnp
from jax import lax
from jax.experimental import pallas as pl
from jax.experimental.pallas import tpu as pltpu


# 48 MiB: fits v7x's 64 MiB physical VMEM with headroom, well under v6e/v5e's 128 MiB.
_VMEM_LIMIT_BYTES = 48 * 1024 * 1024
# Largest contraction dim for which LayerNorm is fused into the QKV matmul (single K tile).
_FUSED_LN_MAX_K = 1024


def _round_up(x, m):
    return ((x + m - 1) // m) * m


# ----------------------------- LayerNorm kernel -----------------------------

def _ln_kernel(x_ref, g_ref, b_ref, o_ref, *, eps):
    x = x_ref[...].astype(jnp.float32)                       # (1, tl, D)
    mu = jnp.mean(x, axis=-1, keepdims=True)
    var = jnp.mean(jnp.square(x - mu), axis=-1, keepdims=True)
    xn = (x - mu) * lax.rsqrt(var + eps)
    o_ref[...] = (xn * g_ref[...].astype(jnp.float32)
                  + b_ref[...].astype(jnp.float32)).astype(o_ref.dtype)


def layernorm_pallas(x, g, b, eps=1e-5, *, tl=512):
    """LayerNorm over the last axis, tiled over the sequence axis."""
    B, L, D = x.shape
    if L <= tl:
        tl_, Lp = L, L
        xp = x
    else:
        tl_ = tl                                             # multiple of 8
        Lp = _round_up(L, tl_)
        xp = jnp.pad(x, ((0, 0), (0, Lp - L), (0, 0)))
    out = pl.pallas_call(
        functools.partial(_ln_kernel, eps=eps),
        out_shape=jax.ShapeDtypeStruct((B, Lp, D), x.dtype),
        grid=(B, Lp // tl_),
        in_specs=[pl.BlockSpec((1, tl_, D), lambda i, j: (i, j, 0)),
                  pl.BlockSpec((1, D), lambda i, j: (0, 0)),
                  pl.BlockSpec((1, D), lambda i, j: (0, 0))],
        out_specs=pl.BlockSpec((1, tl_, D), lambda i, j: (i, j, 0)),
        compiler_params=pltpu.CompilerParams(
            dimension_semantics=("parallel", "parallel"),
            vmem_limit_bytes=_VMEM_LIMIT_BYTES),
    )(xp, g.reshape(1, D), b.reshape(1, D))
    return out[:, :L, :] if Lp != L else out


# ------------------------------- Linear kernels -------------------------------

def _linear_kernel(x_ref, w_ref, b_ref, o_ref, acc_ref):
    @pl.when(pl.program_id(2) == 0)
    def _():
        acc_ref[...] = jnp.zeros_like(acc_ref)
    acc_ref[...] += jnp.dot(x_ref[...].astype(jnp.bfloat16),
                            w_ref[...].astype(jnp.bfloat16),
                            preferred_element_type=jnp.float32)

    @pl.when(pl.program_id(2) == pl.num_programs(2) - 1)
    def _():
        o_ref[...] = (acc_ref[...] + b_ref[...].astype(jnp.float32)).astype(o_ref.dtype)


def _linear_res_kernel(x_ref, w_ref, b_ref, r_ref, o_ref, acc_ref):
    @pl.when(pl.program_id(2) == 0)
    def _():
        acc_ref[...] = jnp.zeros_like(acc_ref)
    acc_ref[...] += jnp.dot(x_ref[...].astype(jnp.bfloat16),
                            w_ref[...].astype(jnp.bfloat16),
                            preferred_element_type=jnp.float32)

    @pl.when(pl.program_id(2) == pl.num_programs(2) - 1)
    def _():
        # fused bias + residual add (saves one full HBM pass over the activations)
        o_ref[...] = (acc_ref[...] + b_ref[...].astype(jnp.float32)
                      + r_ref[...].astype(jnp.float32)).astype(o_ref.dtype)


def linear_pallas(x2d, w, b, residual=None, *, tm=256, tn=256, tk=512):
    """out = x2d @ w + b (+ residual), tiled (M,N,K) with f32 VMEM accumulator.

    Tile defaults target <= ~24 MiB live VMEM; N tiles are multiples of 128 for
    lane-dense stores.  Small dims fall back to full extents; large dims are
    zero-padded to tile multiples.
    """
    M, K = x2d.shape
    N = w.shape[1]

    def pick(dim, t):
        return (dim, dim) if dim <= t else (t, _round_up(dim, t))

    tm_, Mp = pick(M, tm)
    tn_, Np = pick(N, tn)
    tk_, Kp = pick(K, tk)

    xp = x2d if (Mp, Kp) == (M, K) else jnp.pad(x2d, ((0, Mp - M), (0, Kp - K)))
    wp = w if (Kp, Np) == (K, N) else jnp.pad(w, ((0, Kp - K), (0, Np - N)))
    bp = b if Np == N else jnp.pad(b, ((0, Np - N),))
    rp = residual
    if residual is not None and (Mp, Np) != (M, N):
        rp = jnp.pad(residual, ((0, Mp - M), (0, Np - N)))

    in_specs = [pl.BlockSpec((tm_, tk_), lambda i, j, kk: (i, kk)),
                pl.BlockSpec((tk_, tn_), lambda i, j, kk: (kk, j)),
                pl.BlockSpec((1, tn_), lambda i, j, kk: (0, j))]
    operands = [xp, wp, bp.reshape(1, Np)]
    kernel = _linear_kernel
    if residual is not None:
        in_specs.append(pl.BlockSpec((tm_, tn_), lambda i, j, kk: (i, j)))
        operands.append(rp)
        kernel = _linear_res_kernel

    out = pl.pallas_call(
        kernel,
        out_shape=jax.ShapeDtypeStruct((Mp, Np), x2d.dtype),
        grid=(Mp // tm_, Np // tn_, Kp // tk_),
        in_specs=in_specs,
        out_specs=pl.BlockSpec((tm_, tn_), lambda i, j, kk: (i, j)),
        scratch_shapes=[pltpu.VMEM((tm_, tn_), jnp.float32)],
        compiler_params=pltpu.CompilerParams(
            dimension_semantics=("parallel", "parallel", "arbitrary"),
            vmem_limit_bytes=_VMEM_LIMIT_BYTES),
    )(*operands)
    if (Mp, Np) != (M, N):
        out = out[:M, :N]
    return out


# --------------------- fused LayerNorm + Linear kernel -----------------------

def _ln_linear_kernel(x_ref, g_ref, bln_ref, w_ref, b_ref, o_ref, *, eps):
    # LayerNorm over the full (resident) K dim, then one MXU push.  Recomputing LN
    # per N-tile is cheap VPU work; skipping the xn HBM write+read is the win.
    x = x_ref[...].astype(jnp.float32)                        # (tm, D)
    mu = jnp.mean(x, axis=-1, keepdims=True)
    var = jnp.mean(jnp.square(x - mu), axis=-1, keepdims=True)
    xn = ((x - mu) * lax.rsqrt(var + eps) * g_ref[...].astype(jnp.float32)
          + bln_ref[...].astype(jnp.float32))
    o_ref[...] = (jnp.dot(xn.astype(jnp.bfloat16),
                          w_ref[...].astype(jnp.bfloat16),
                          preferred_element_type=jnp.float32)
                  + b_ref[...].astype(jnp.float32)).astype(o_ref.dtype)


def ln_linear_pallas(x2d, g, bln, w, b, eps=1e-5, *, tm=256, tn=256):
    """out = LayerNorm(x2d) @ w + b with the LN fused into the matmul kernel.

    Requires the full contraction dim to fit a single K block (K is never padded,
    so LN statistics stay exact).  Grid (M/tm, N/tn); the x block index is constant
    across the N axis, so the x tile stays resident and is only DMA'd once per M tile.
    """
    M, K = x2d.shape
    N = w.shape[1]

    def pick(dim, t):
        return (dim, dim) if dim <= t else (t, _round_up(dim, t))

    tm_, Mp = pick(M, tm)
    tn_, Np = pick(N, tn)

    xp = x2d if Mp == M else jnp.pad(x2d, ((0, Mp - M), (0, 0)))
    wp = w if Np == N else jnp.pad(w, ((0, 0), (0, Np - N)))
    bp = b if Np == N else jnp.pad(b, ((0, Np - N),))

    out = pl.pallas_call(
        functools.partial(_ln_linear_kernel, eps=eps),
        out_shape=jax.ShapeDtypeStruct((Mp, Np), x2d.dtype),
        grid=(Mp // tm_, Np // tn_),
        in_specs=[pl.BlockSpec((tm_, K), lambda i, j: (i, 0)),
                  pl.BlockSpec((1, K), lambda i, j: (0, 0)),
                  pl.BlockSpec((1, K), lambda i, j: (0, 0)),
                  pl.BlockSpec((K, tn_), lambda i, j: (0, j)),
                  pl.BlockSpec((1, tn_), lambda i, j: (0, j))],
        out_specs=pl.BlockSpec((tm_, tn_), lambda i, j: (i, j)),
        compiler_params=pltpu.CompilerParams(
            dimension_semantics=("parallel", "parallel"),
            vmem_limit_bytes=_VMEM_LIMIT_BYTES),
    )(xp, g.reshape(1, K), bln.reshape(1, K), wp, bp.reshape(1, Np))
    if (Mp, Np) != (M, N):
        out = out[:M, :N]
    return out


# ------------------------------ Attention kernel -----------------------------

def _attn_kernel(q_ref, k_ref, v_ref, a_ref, o_ref, *, scale, n_valid):
    # Scale folded into Q before the MXU push; bf16 operands, f32 accumulation.
    q = (q_ref[0].astype(jnp.float32) * scale).astype(jnp.bfloat16)   # (tq, hd)
    k = k_ref[0].astype(jnp.bfloat16)                                  # (Lp, hd)
    v = v_ref[0].astype(jnp.bfloat16)                                  # (Lp, hd)
    # Contract on the hd axis of both operands (no explicit K transpose).
    s = lax.dot_general(q, k, (((1,), (1,)), ((), ())),
                        preferred_element_type=jnp.float32)            # (tq, Lp)
    if n_valid is not None:                                            # padded keys
        col = lax.broadcasted_iota(jnp.int32, s.shape, 1)
        s = jnp.where(col < n_valid, s, -1e30)
    m = jnp.max(s, axis=-1, keepdims=True)
    e = jnp.exp(s - m)
    p = e * pl.reciprocal(jnp.sum(e, axis=-1, keepdims=True), approx=True)
    a_ref[0] = p.astype(a_ref.dtype)
    o_ref[0] = jnp.dot(p.astype(jnp.bfloat16), v,
                       preferred_element_type=jnp.float32).astype(o_ref.dtype)


def attention_pallas(q, k, v, scale, *, tq=128, attn_dtype=jnp.float32):
    """Query-tiled exact-softmax attention.

    The module must return the full (B,H,L,L) attention matrix, so the O(L^2)
    writeback is irreducible; we bound VMEM to O(tq*L) per step instead of (L,L)
    and keep K/V resident per (batch*head) (their block index does not depend on
    the q-tile axis, so they are not re-fetched across q tiles).
    """
    BH, L, hd = q.shape
    if L <= tq:
        tq_, Lp = L, L
    else:
        tq_ = tq                                              # multiple of 8
        Lp = _round_up(L, tq_)
    if Lp != L:
        pad = ((0, 0), (0, Lp - L), (0, 0))
        q, k, v = jnp.pad(q, pad), jnp.pad(k, pad), jnp.pad(v, pad)

    attn, out = pl.pallas_call(
        functools.partial(_attn_kernel, scale=scale,
                          n_valid=(L if Lp != L else None)),
        out_shape=(jax.ShapeDtypeStruct((BH, Lp, Lp), attn_dtype),
                   jax.ShapeDtypeStruct((BH, Lp, hd), q.dtype)),
        grid=(BH, Lp // tq_),
        in_specs=[pl.BlockSpec((1, tq_, hd), lambda i, j: (i, j, 0)),
                  pl.BlockSpec((1, Lp, hd), lambda i, j: (i, 0, 0)),
                  pl.BlockSpec((1, Lp, hd), lambda i, j: (i, 0, 0))],
        out_specs=(pl.BlockSpec((1, tq_, Lp), lambda i, j: (i, j, 0)),
                   pl.BlockSpec((1, tq_, hd), lambda i, j: (i, j, 0))),
        compiler_params=pltpu.CompilerParams(
            dimension_semantics=("parallel", "parallel"),
            vmem_limit_bytes=_VMEM_LIMIT_BYTES),
    )(q, k, v)
    if Lp != L:
        attn = attn[:, :L, :L]
        out = out[:, :L, :]
    return attn, out


# -------------------------------- PPEG kernel --------------------------------

def _ppeg_kernel(xp_ref, w0_ref, w1_ref, w2_ref, bsum_ref, o_ref, *, H, W, P, ksizes):
    xp = xp_ref[0].astype(jnp.float32)                        # (Hp, Wp, tc)
    # identity tap + summed biases
    acc = xp[P:P + H, P:P + W, :] + bsum_ref[...].astype(jnp.float32)
    for ksz, w_ref in zip(ksizes, (w0_ref, w1_ref, w2_ref)):
        p = ksz // 2
        w = w_ref[...].astype(jnp.float32)                    # (k, k, tc)
        for b in range(ksz):
            # one sublane-offset column slice per column tap (hoisted out of the a-loop)
            cb = xp[:, P - p + b:P - p + b + W, :]            # (Hp, W, tc)
            for a in range(ksz):
                # leading-axis row slices are cheap (no sublane relayout)
                acc = acc + cb[P - p + a:P - p + a + H, :, :] * w[a, b, :]
    o_ref[0] = acc.astype(o_ref.dtype)


def ppeg_pallas(x, pp, peg_k):
    """PPEG positional embedding: identity + three depthwise convs, NHWC layout."""
    B, N, C = x.shape
    Hg = int(math.ceil(math.sqrt(N)))
    Wg = Hg
    add_length = Hg * Wg - N
    if add_length > 0:
        x = jnp.concatenate([x, x[:, :add_length, :]], axis=1)
    feat = x.reshape(B, Hg, Wg, C)
    ksizes = (peg_k, 5, 3)
    P = max(ksizes) // 2
    xp = jnp.pad(feat, ((0, 0), (P, P), (P, P), (0, 0)))
    bsum = (pp['b0'] + pp['b1'] + pp['b2']).reshape(1, C)
    Hp, Wp = Hg + 2 * P, Wg + 2 * P

    # depthwise conv is channel-independent -> tile channels (128-lane blocks)
    tc = 128 if (C % 128 == 0) else C

    out = pl.pallas_call(
        functools.partial(_ppeg_kernel, H=Hg, W=Wg, P=P, ksizes=ksizes),
        out_shape=jax.ShapeDtypeStruct((B, Hg, Wg, C), x.dtype),
        grid=(B, C // tc),
        in_specs=[pl.BlockSpec((1, Hp, Wp, tc), lambda i, c: (i, 0, 0, c)),
                  pl.BlockSpec((ksizes[0], ksizes[0], tc), lambda i, c: (0, 0, c)),
                  pl.BlockSpec((ksizes[1], ksizes[1], tc), lambda i, c: (0, 0, c)),
                  pl.BlockSpec((ksizes[2], ksizes[2], tc), lambda i, c: (0, 0, c)),
                  pl.BlockSpec((1, tc), lambda i, c: (0, c))],
        out_specs=pl.BlockSpec((1, Hg, Wg, tc), lambda i, c: (i, 0, 0, c)),
        compiler_params=pltpu.CompilerParams(
            dimension_semantics=("parallel", "parallel"),
            vmem_limit_bytes=_VMEM_LIMIT_BYTES),
    )(xp, pp['w0'], pp['w1'], pp['w2'], bsum)

    return out.reshape(B, Hg * Wg, C)[:, :N, :]


# ------------------------------ model glue ---------------------------------

def trans_layer(x, p, head):
    B, L, D = x.shape
    hd = D // head
    # Pre-norm + fused QKV projection.  For mlp_dim up to _FUSED_LN_MAX_K the full
    # contraction dim fits one K block, so LayerNorm is fused into the matmul kernel
    # (saves a full HBM write+read of the normalized activations).
    if D <= _FUSED_LN_MAX_K:
        qkv = ln_linear_pallas(x.reshape(B * L, D), p['ln_g'], p['ln_b'],
                               p['w_qkv'], p['b_qkv'])
    else:
        xn = layernorm_pallas(x, p['ln_g'], p['ln_b'])
        qkv = linear_pallas(xn.reshape(B * L, D), p['w_qkv'], p['b_qkv'])
    # head split done in XLA: hd is too narrow (< 128 lanes) for a legal BlockSpec
    # column slice, so emitting q/k/v directly from the matmul kernel isn't viable.
    qkv = qkv.reshape(B, L, 3, head, hd).transpose(2, 0, 3, 1, 4)     # (3, B, H, L, hd)
    q, k, v = qkv[0], qkv[1], qkv[2]
    attn, out = attention_pallas(q.reshape(B * head, L, hd),
                                 k.reshape(B * head, L, hd),
                                 v.reshape(B * head, L, hd),
                                 scale=hd ** -0.5)
    attn = attn.reshape(B, head, L, L)
    out = out.reshape(B, head, L, hd).transpose(0, 2, 1, 3).reshape(B * L, D)
    # output projection with fused bias + residual add
    out = linear_pallas(out, p['w_proj'], p['b_proj'],
                        residual=x.reshape(B * L, D)).reshape(B, L, D)
    return out, attn, v


def sattention_forward(x, params, head=8, peg_k=7):
    B, N, D = x.shape
    cls = jnp.broadcast_to(params['cls_token'], (B, 1, D))
    x = jnp.concatenate([cls, x], axis=1)                    # (B, N+1, D)
    x, attn1, v = trans_layer(x, params['layer1'], head)
    feat = ppeg_pallas(x[:, 1:, :], params['ppeg'], peg_k)   # pos embedding on patch tokens
    x = x.at[:, 1:, :].set(feat)
    x, attn2, _ = trans_layer(x, params['layer2'], head)
    # only logits = norm(x)[:, 0, :] are returned -> normalize the cls row only
    logits = layernorm_pallas(x[:, 0:1, :], params['norm_g'], params['norm_b'])[:, 0, :]
    return logits, [attn1, attn2], v

# TODO(synk): the unused `masking()` helper (torch.gather-based shuffle) is not part of
# the forward pass and is not implemented here.


# --------------------------- pure-JAX reference ----------------------------

def _ln_ref(x, g, b, eps=1e-5):
    mu = jnp.mean(x, -1, keepdims=True)
    var = jnp.mean((x - mu) ** 2, -1, keepdims=True)
    return (x - mu) * lax.rsqrt(var + eps) * g + b


def _trans_layer_ref(x, p, head):
    B, L, D = x.shape
    hd = D // head
    xn = _ln_ref(x, p['ln_g'], p['ln_b'])
    qkv = (xn @ p['w_qkv'] + p['b_qkv']).reshape(B, L, 3, head, hd).transpose(2, 0, 3, 1, 4)
    q, k, v = qkv[0], qkv[1], qkv[2]
    s = jnp.einsum('bhqd,bhkd->bhqk', q, k) * (hd ** -0.5)
    a = jax.nn.softmax(s, -1)
    o = jnp.einsum('bhqk,bhkd->bhqd', a, v).transpose(0, 2, 1, 3).reshape(B, L, D)
    o = o @ p['w_proj'] + p['b_proj']
    return x + o, a, v


def _ppeg_ref(x, pp, peg_k):
    B, N, C = x.shape
    Hg = int(math.ceil(math.sqrt(N)))
    add = Hg * Hg - N
    if add > 0:
        x = jnp.concatenate([x, x[:, :add, :]], axis=1)
    feat = x.reshape(B, Hg, Hg, C)
    out = feat
    for k, w, b in ((peg_k, pp['w0'], pp['b0']), (5, pp['w1'], pp['b1']), (3, pp['w2'], pp['b2'])):
        y = lax.conv_general_dilated(
            feat, w.reshape(k, k, 1, C), (1, 1), 'SAME',
            dimension_numbers=('NHWC', 'HWIO', 'NHWC'),
            feature_group_count=C) + b
        out = out + y
    return out.reshape(B, Hg * Hg, C)[:, :N, :]


def sattention_forward_ref(x, params, head=8, peg_k=7):
    B, N, D = x.shape
    cls = jnp.broadcast_to(params['cls_token'], (B, 1, D))
    x = jnp.concatenate([cls, x], axis=1)
    x, a1, v = _trans_layer_ref(x, params['layer1'], head)
    x = x.at[:, 1:, :].set(_ppeg_ref(x[:, 1:, :], params['ppeg'], peg_k))
    x, a2, _ = _trans_layer_ref(x, params['layer2'], head)
    x = _ln_ref(x, params['norm_g'], params['norm_b'])
    return x[:, 0, :], [a1, a2], v


# --------------------------------- params ----------------------------------

def init_params(key, dim, peg_k):
    ks = jax.random.split(key, 12)

    def layer_params(k0, k1):
        return dict(
            ln_g=jnp.ones((dim,), jnp.float32),
            ln_b=jnp.zeros((dim,), jnp.float32),
            w_qkv=jax.random.normal(k0, (dim, 3 * dim), jnp.float32) * 0.02,
            b_qkv=jnp.zeros((3 * dim,), jnp.float32),
            w_proj=jax.random.normal(k1, (dim, dim), jnp.float32) * 0.02,
            b_proj=jnp.zeros((dim,), jnp.float32),
        )

    ppeg = dict(
        w0=jax.random.normal(ks[5], (peg_k, peg_k, dim), jnp.float32) * 0.02,
        b0=jax.random.normal(ks[6], (dim,), jnp.float32) * 0.02,
        w1=jax.random.normal(ks[7], (5, 5, dim), jnp.float32) * 0.02,
        b1=jax.random.normal(ks[8], (dim,), jnp.float32) * 0.02,
        w2=jax.random.normal(ks[9], (3, 3, dim), jnp.float32) * 0.02,
        b2=jax.random.normal(ks[10], (dim,), jnp.float32) * 0.02,
    )
    return dict(
        cls_token=jax.random.normal(ks[0], (1, 1, dim), jnp.float32),
        norm_g=jnp.ones((dim,), jnp.float32),
        norm_b=jnp.zeros((dim,), jnp.float32),
        layer1=layer_params(ks[1], ks[2]),
        layer2=layer_params(ks[3], ks[4]),
        ppeg=ppeg,
    )


# ----------------------------------- main -----------------------------------

if __name__ == "__main__":
    B, N, D, HEAD, PEG_K = 2, 16, 64, 8, 7
    key = jax.random.PRNGKey(0)
    k_x, k_p = jax.random.split(key)
    x = jax.random.normal(k_x, (B, N, D), jnp.float32)
    params = init_params(k_p, D, PEG_K)

    logits, attns, v = sattention_forward(x, params, head=HEAD, peg_k=PEG_K)
    jax.block_until_ready(logits)
    jax.block_until_ready(attns)
    jax.block_until_ready(v)

    # sanity-check against a pure-JAX reference (bf16 MXU path -> loose tolerances)
    logits_r, attns_r, v_r = sattention_forward_ref(x, params, head=HEAD, peg_k=PEG_K)
    assert logits.shape == (B, D)
    assert attns[0].shape == (B, HEAD, N + 1, N + 1)
    assert v.shape == (B, HEAD, N + 1, D // HEAD)
    assert jnp.allclose(logits, logits_r, atol=5e-2, rtol=5e-2)
    assert jnp.allclose(attns[0], attns_r[0], atol=5e-2, rtol=5e-2)
    assert jnp.allclose(attns[1], attns_r[1], atol=5e-2, rtol=5e-2)
    assert jnp.allclose(v, v_r, atol=5e-2, rtol=5e-2)

    print("KERNEL_OK")
</pallas_src>

<mosaic_0001>
module attributes {stable_mosaic.version = 11 : i64} {
  func.func @_ln_linear_kernel(%arg0: i32, %arg1: i32, %arg2: memref<34x64xf32, #tpu.memory_space<vmem>>, %arg3: memref<1x64xf32, #tpu.memory_space<vmem>>, %arg4: memref<1x64xf32, #tpu.memory_space<vmem>>, %arg5: memref<64x192xf32, #tpu.memory_space<vmem>>, %arg6: memref<1x192xf32, #tpu.memory_space<vmem>>, %arg7: memref<34x192xf32, #tpu.memory_space<vmem>>) attributes {dimension_semantics = [#tpu.dimension_semantics<parallel>, #tpu.dimension_semantics<parallel>], iteration_bounds = array<i64: 1, 1>, scalar_prefetch = 0 : i64, scratch_operands = 0 : i64, tpu.core_type = #tpu.core_type<tc>, window_params = [{transform_indices = @transform_0, window_bounds = array<i64: 34, 64>}, {pipeline_mode = #tpu.pipeline_mode<synchronous>, transform_indices = @transform_1, window_bounds = array<i64: 1, 64>}, {pipeline_mode = #tpu.pipeline_mode<synchronous>, transform_indices = @transform_2, window_bounds = array<i64: 1, 64>}, {transform_indices = @transform_3, window_bounds = array<i64: 64, 192>}, {transform_indices = @transform_4, window_bounds = array<i64: 1, 192>}, {transform_indices = @transform_5, window_bounds = array<i64: 34, 192>}]} {
    %c0 = arith.constant 0 : index
    %c0_0 = arith.constant 0 : index
    %0 = vector.load %arg2[%c0, %c0_0] : memref<34x64xf32, #tpu.memory_space<vmem>>, vector<34x64xf32>
    %cst = arith.constant dense<0.000000e+00> : vector<34xf32>
    %1 = vector.multi_reduction <add>, %0, %cst [1] : vector<34x64xf32> to vector<34xf32>
    %2 = vector.shape_cast %1 : vector<34xf32> to vector<34x1xf32>
    %cst_1 = arith.constant 6.400000e+01 : f32
    %3 = vector.broadcast %cst_1 : f32 to vector<34x1xf32>
    %4 = arith.divf %2, %3 : vector<34x1xf32>
    %5 = vector.broadcast %4 : vector<34x1xf32> to vector<34x64xf32>
    %6 = arith.subf %0, %5 : vector<34x64xf32>
    %7 = arith.mulf %6, %6 : vector<34x64xf32>
    %cst_2 = arith.constant dense<0.000000e+00> : vector<34xf32>
    %8 = vector.multi_reduction <add>, %7, %cst_2 [1] : vector<34x64xf32> to vector<34xf32>
    %9 = vector.shape_cast %8 : vector<34xf32> to vector<34x1xf32>
    %cst_3 = arith.constant 6.400000e+01 : f32
    %10 = vector.broadcast %cst_3 : f32 to vector<34x1xf32>
    %11 = arith.divf %9, %10 : vector<34x1xf32>
    %12 = vector.broadcast %4 : vector<34x1xf32> to vector<34x64xf32>
    %13 = arith.subf %0, %12 : vector<34x64xf32>
    %cst_4 = arith.constant 9.99999974E-6 : f32
    %14 = vector.broadcast %cst_4 : f32 to vector<34x1xf32>
    %15 = arith.addf %11, %14 : vector<34x1xf32>
    %16 = math.rsqrt %15 : vector<34x1xf32>
    %17 = vector.broadcast %16 : vector<34x1xf32> to vector<34x64xf32>
    %18 = arith.mulf %13, %17 : vector<34x64xf32>
    %c0_5 = arith.constant 0 : index
    %c0_6 = arith.constant 0 : index
    %19 = vector.load %arg3[%c0_5, %c0_6] : memref<1x64xf32, #tpu.memory_space<vmem>>, vector<1x64xf32>
    %20 = vector.broadcast %19 : vector<1x64xf32> to vector<34x64xf32>
    %21 = arith.mulf %18, %20 : vector<34x64xf32>
    %c0_7 = arith.constant 0 : index
    %c0_8 = arith.constant 0 : index
    %22 = vector.load %arg4[%c0_7, %c0_8] : memref<1x64xf32, #tpu.memory_space<vmem>>, vector<1x64xf32>
    %23 = vector.broadcast %22 : vector<1x64xf32> to vector<34x64xf32>
    %24 = arith.addf %21, %23 : vector<34x64xf32>
    %25 = arith.truncf %24 : vector<34x64xf32> to vector<34x64xbf16>
    %c0_9 = arith.constant 0 : index
    %c0_10 = arith.constant 0 : index
    %26 = vector.load %arg5[%c0_9, %c0_10] : memref<64x192xf32, #tpu.memory_space<vmem>>, vector<64x192xf32>
    %27 = arith.truncf %26 : vector<64x192xf32> to vector<64x192xbf16>
    %cst_11 = arith.constant dense<0.000000e+00> : vector<34x192xf32>
    %28 = tpu.matmul %25, %27, %cst_11 {dimension_numbers = #tpu.dot_dimension_numbers<[1], [0], [0], [1], [0, 0, 1, 1], [], []>} : vector<34x64xbf16>, vector<64x192xbf16>, vector<34x192xf32> -> vector<34x192xf32>
    %c0_12 = arith.constant 0 : index
    %c0_13 = arith.constant 0 : index
    %29 = vector.load %arg6[%c0_12, %c0_13] : memref<1x192xf32, #tpu.memory_space<vmem>>, vector<1x192xf32>
    %30 = vector.broadcast %29 : vector<1x192xf32> to vector<34x192xf32>
    %31 = arith.addf %28, %30 : vector<34x192xf32>
    %c0_14 = arith.constant 0 : index
    %c0_15 = arith.constant 0 : index
    %32 = vector.load %arg7[%c0_14, %c0_15] : memref<34x192xf32, #tpu.memory_space<vmem>>, vector<34x192xf32>
    tpu.vector_store %arg7[%c0_14, %c0_15], %31 {strides = array<i32>} : memref<34x192xf32, #tpu.memory_space<vmem>>, vector<34x192xf32>,
    return
  }
  func.func @transform_0(%arg0: i32, %arg1: i32) -> (i32, i32) {
    %c0_i32 = arith.constant 0 : i32
    %c0_i32_0 = arith.constant 0 : i32
    return %arg0, %c0_i32 : i32, i32
  }
  func.func @transform_1(%arg0: i32, %arg1: i32) -> (i32, i32) {
    %c0_i32 = arith.constant 0 : i32
    %c0_i32_0 = arith.constant 0 : i32
    %c0_i32_1 = arith.constant 0 : i32
    return %c0_i32, %c0_i32_0 : i32, i32
  }
  func.func @transform_2(%arg0: i32, %arg1: i32) -> (i32, i32) {
    %c0_i32 = arith.constant 0 : i32
    %c0_i32_0 = arith.constant 0 : i32
    %c0_i32_1 = arith.constant 0 : i32
    return %c0_i32, %c0_i32_0 : i32, i32
  }
  func.func @transform_3(%arg0: i32, %arg1: i32) -> (i32, i32) {
    %c0_i32 = arith.constant 0 : i32
    %c0_i32_0 = arith.constant 0 : i32
    return %c0_i32, %arg1 : i32, i32
  }
  func.func @transform_4(%arg0: i32, %arg1: i32) -> (i32, i32) {
    %c0_i32 = arith.constant 0 : i32
    %c0_i32_0 = arith.constant 0 : i32
    return %c0_i32, %arg1 : i32, i32
  }
  func.func @transform_5(%arg0: i32, %arg1: i32) -> (i32, i32) {
    %c0_i32 = arith.constant 0 : i32
    return %arg0, %arg1 : i32, i32
  }
}

</mosaic_0001>

<bundles_post_ra>
// kernel: tpu_custom_call.1
= control target key start
LH: loop header
LB: loop body
LE: loop exit
PB: predicated region body
PF: predicated region fallthrough
CT: control target
= control target key end

     0   :  { %10 = vsyncpa [#allocation3], 0  ;;  %s522_s0 = inlined_call_operand.hbm [shape: f32[34,64], index: 0, kind: input, shape index: {}]   ;;  %s523_s1 = inlined_call_operand.vmem [shape: f32[1,64], index: 1, kind: input, shape index: {}]   ;;  %s524_s2 = inlined_call_operand.hbm [shape: f32[1,64], index: 2, kind: input, shape index: {}]   ;;  %s525_s3 = inlined_call_operand.hbm [shape: f32[64,192], index: 3, kind: input, shape index: {}]   ;;  %s526_s4 = inlined_call_operand.vmem [shape: f32[1,192], index: 4, kind: input, shape index: {}]   ;;  %s527_s5 = inlined_call_operand.hbm [shape: f32[34,192], index: 5, kind: output, shape index: {}]  }
   0x1   :  { %11 = vsyncpa [#allocation6], 0 }
   0x2   :  { %12 = vsyncpa [#allocation4], 0  ;;  %s413_s18 = smov [#allocation5]   ;;  %s414_s20 = smov [#allocation2]  }
   0x3   :  { %s33_s19 = sshll.u32 %s413_s18, 4  ;;  %s18_s21 = sshll.u32 %s414_s20, 4  ;;  %s34_s19 = int_to_ptr.vmem [resolvable:$true] %s33_s19  ;;  %s19_s21 = int_to_ptr.vmem [resolvable:$true] %s18_s21 }
   0x4   :  { %s335_s22 = scalar_lea.vmem %s34_s19, 16  ;;  %s339_s23 = scalar_lea.vmem %s34_s19, 32 }
   0x5   :  { %p336_p0 = scmp.ne.s32.totalorder %s34_s19, %s335_s22  ;;  %p340_p1 = scmp.lt.s32.totalorder %s34_s19, %s34_s19 }
   0x6   :  { %p341_p2 = scmp.lt.s32.totalorder %s339_s23, %s335_s22 }
   0x8   :  { %p342_p3 = por %p341_p2, %p340_p1 }
   0xa   :  { %p343_p4 = pnand %p342_p3, %p336_p0 }
   0xc   :  { %346 = shalt.err (!%p343_p4)
}
   0xd   :  { %36 = dma.hbm_to_vmem [thread:$0]  %s524_s2, 16, %s34_s19, [#allocation6]  }
   0xe   :  { %s355_s26 = scalar_lea.vmem %s19_s21, 640  ;;  %p360_p6 = scmp.lt.s32.totalorder %s19_s21, %s19_s21 }
   0xf   :  { %p356_p5 = scmp.ne.s32.totalorder %s19_s21, %s355_s26  ;;  %p361_p7 = scmp.lt.s32.totalorder %s355_s26, %s355_s26 }
  0x11   :  { %p362_p8 = por %p361_p7, %p360_p6 }
  0x13   :  { %p363_p9 = pnand %p362_p8, %p356_p5 }
  0x15   :  { %366 = shalt.err (!%p363_p9)
}
  0x16   :  { %s415_s27 = smov 128   ;;  %s416_s28 = smov 8  }
  0x17   :  { %24 = dma.hbm_to_vmem [thread:$0]  %s522_s0, 640, %s19_s21, [#allocation3], %s415_s27, %s415_s27, %s416_s28  }
  0x18   :  { %s417_s6 = smov [#allocation7]  }
  0x19   :  { %s42_s7 = sshll.u32 %s417_s6, 4  ;;  %s43_s7 = int_to_ptr.vmem [resolvable:$true] %s42_s7 }
  0x1a   :  { %s375_s8 = scalar_lea.vmem %s43_s7, 2048  ;;  %p380_p11 = scmp.lt.s32.totalorder %s43_s7, %s43_s7 }
  0x1b   :  { %p376_p10 = scmp.ne.s32.totalorder %s43_s7, %s375_s8  ;;  %p381_p12 = scmp.lt.s32.totalorder %s375_s8, %s375_s8 }
  0x1d   :  { %p382_p13 = por %p381_p12, %p380_p11 }
  0x1f   :  { %p383_p0 = pnand %p382_p13, %p376_p10 }
  0x21   :  { %386 = shalt.err (!%p383_p0)
}
  0x22   :  { %s418_s2 = smov 256   ;;  %s419_s9 = smov 16  }
  0x23   :  { %48 = dma.hbm_to_vmem [thread:$0]  %s525_s3, 2048, %s43_s7, [#allocation6], %s418_s2, %s418_s2, %s419_s9  }
  0x24   :  { %407 = dma.done.wait [#allocation3], 640  }
  0x25   :  { %408 = vsyncadd [#allocation3], 4294966656 }
  0x26   :  { %409 = dma.done.wait [#allocation6], 2064  }
  0x27   :  { %410 = vsyncadd [#allocation6], 4294965232  ;;  %vm66_vm0 = vcmask 523264   ;;  %v63_v0 = vld [vmem:[#allocation2 + $0x10] sm:$0xff]  ;;  %v64_v1 = vld [vmem:[#allocation2 + $0x18] sm:$0xff]  ;;  %vm79_vm1 = vcmask 517120  }
  0x28   :  { %v61_v2 = vld [vmem:[#allocation2] sm:$0xff]  ;;  %v73_v3 = vsel %vm66_vm0, %v63_v0, 0.0  ;;  %v62_v5 = vld [vmem:[#allocation2 + $0x8] sm:$0xff]  ;;  %v76_v6 = vsel %vm66_vm0, %v64_v1, 0.0  ;;  %v174_v35 = vld [vmem:[#allocation7 + $0x68] sm:$0xff]  ;;  %v420_v45 = vmov 0  }
  0x29   :  { %v67_v4 = vsel %vm66_vm0, %v61_v2, 0.0  ;;  %74 = vadd.xlane.f32.xlu0 %v73_v3  ;;  %v70_v7 = vsel %vm66_vm0, %v62_v5, 0.0  ;;  %v65_v8 = vld [vmem:[#allocation2 + $0x20] sm:$0x3]  ;;  %v176_v36 = vld [vmem:[#allocation7 + $0x78] sm:$0xff]  ;;  %v173_v38 = vld [vmem:[#allocation7 + $0x60] sm:$0xff]  ;;  %248 = vmatprep.mubr.bf16.mxu1 %v420_v45 }
  0x2a   :  { %68 = vadd.xlane.f32.xlu1 %v67_v4  ;;  %v80_v9 = vsel %vm79_vm1, %v65_v8, 0.0  ;;  %v184_v37 = vpack.c.bf16 %v176_v36, %v174_v35  ;;  %v175_v39 = vld [vmem:[#allocation7 + $0x70] sm:$0xff]  ;;  %v170_v40 = vld [vmem:[#allocation7 + $0x48] sm:$0xff]  ;;  %v172_v42 = vld [vmem:[#allocation7 + $0x58] sm:$0xff]  ;;  %238 = vmatprep.mubr.bf16.mxu0 %v420_v45 }
  0x2b   :  { %v183_v41 = vpack.c.bf16 %v175_v39, %v173_v38  ;;  %v169_v43 = vld [vmem:[#allocation7 + $0x40] sm:$0xff]  ;;  %v171_v44 = vld [vmem:[#allocation7 + $0x50] sm:$0xff]  ;;  %v182_v46 = vpack.c.bf16 %v172_v42, %v170_v40  ;;  %v166_v47 = vld [vmem:[#allocation7 + $0x28] sm:$0xff] }
  0x2c   :  { %300 = vmatprep.subr.bf16.mxu1 %v184_v37  ;;  %214 = vmatprep.subr.bf16.mxu0 %v184_v37  ;;  %v168_v48 = vld [vmem:[#allocation7 + $0x38] sm:$0xff]  ;;  %v181_v49 = vpack.c.bf16 %v171_v44, %v169_v43  ;;  %v165_v51 = vld [vmem:[#allocation7 + $0x20] sm:$0xff]  ;;  %v167_v52 = vld [vmem:[#allocation7 + $0x30] sm:$0xff] }
  0x2d   :  { %77 = vadd.xlane.f32.xlu0 %v76_v6  ;;  %304 = vmatpush1.bf16.msra.mxu1 %v183_v41  ;;  %v180_v50 = vpack.c.bf16 %v168_v48, %v166_v47  ;;  %v162_v53 = vld [vmem:[#allocation7 + $0x8] sm:$0xff]  ;;  %v164_v54 = vld [vmem:[#allocation7 + $0x18] sm:$0xff]  ;;  %v179_v55 = vpack.c.bf16 %v167_v52, %v165_v51  ;;  %v161_v57 = vld [vmem:[#allocation7] sm:$0xff] }
  0x2e   :  { %71 = vadd.xlane.f32.xlu1 %v70_v7  ;;  %215 = vmatpush1.bf16.msra.mxu0 %v183_v41  ;;  %v178_v56 = vpack.c.bf16 %v164_v54, %v162_v53  ;;  %v163_v58 = vld [vmem:[#allocation7 + $0x10] sm:$0xff] }
  0x2f   :  { %301 = vmatprep.subr.bf16.mxu1 %v182_v46  ;;  %216 = vmatprep.subr.bf16.mxu0 %v182_v46  ;;  %v177_v59 = vpack.c.bf16 %v163_v58, %v161_v57 }
  0x31   :  { %81 = vadd.xlane.f32.xlu0 %v80_v9  ;;  %305 = vmatpush1.bf16.msra.mxu1 %v181_v49 }
  0x32   :  { %217 = vmatpush1.bf16.msra.mxu0 %v181_v49  ;;  %302 = vmatprep.subr.bf16.mxu1 %v180_v50 }
  0x33   :  { %218 = vmatprep.subr.bf16.mxu0 %v180_v50 }
  0x35   :  { %306 = vmatpush1.bf16.msra.mxu1 %v179_v55 }
  0x36   :  { %219 = vmatpush1.bf16.msra.mxu0 %v179_v55  ;;  %303 = vmatprep.subr.bf16.mxu1 %v178_v56 }
  0x37   :  { %220 = vmatprep.subr.bf16.mxu0 %v178_v56 }
  0x39   :  { %307 = vmatpush1.bf16.msra.mxu1 %v177_v59 }
  0x3a   :  { %221 = vmatpush1.bf16.msra.mxu0 %v177_v59 }
  0xb2   :  { %v75_v10 = vpop.xlane.xlu0 %74 }
  0xb3   :  { %v69_v11 = vpop.xlane.xlu1 %68  ;;  %v86_v12 = vmul.f32 0.015625, %v75_v10 }
  0xb4   :  { %v84_v13 = vmul.f32 0.015625, %v69_v11 }
  0xb5   :  { %v469_v14 = vsub.f32 %v63_v0, %v86_v12 }
  0xb6   :  { %v471_v15 = vsub.f32 %v61_v2, %v84_v13  ;;  %v78_v16 = vpop.xlane.xlu0 %77  ;;  %v295_v13 = vld [vmem:[%s523_s1] ss:$0 sm:$0xff] }
  0xb7   :  { %v72_v17 = vpop.xlane.xlu1 %71  ;;  %v87_v18 = vmul.f32 0.015625, %v78_v16  ;;  %v96_v19 = vmul.f32 %v469_v14, %v469_v14 }
  0xb8   :  { %v85_v20 = vmul.f32 0.015625, %v72_v17  ;;  %v94_v21 = vmul.f32 %v471_v15, %v471_v15 }
  0xb9   :  { %v477_v22 = vsub.f32 %v64_v1, %v87_v18  ;;  %v105_v23 = vsel %vm66_vm0, %v96_v19, 0.0 }
  0xba   :  { %v480_v24 = vsub.f32 %v62_v5, %v85_v20  ;;  %v82_v25 = vpop.xlane.xlu0 %81  ;;  %106 = vadd.xlane.f32.xlu1 %v105_v23  ;;  %v99_v28 = vsel %vm66_vm0, %v94_v21, 0.0  ;;  %v296_v20 = vld [vmem:[#allocation5] ss:$0 sm:$0xff] }
  0xbb   :  { %v88_v26 = vmul.f32 0.015625, %v82_v25  ;;  %v97_v27 = vmul.f32 %v477_v22, %v477_v22 }
  0xbc   :  { %v95_v29 = vmul.f32 %v480_v24, %v480_v24 }
  0xbd   :  { %v487_v30 = vsub.f32 %v65_v8, %v88_v26  ;;  %v108_v31 = vsel %vm66_vm0, %v97_v27, 0.0 }
  0xbe   :  { %109 = vadd.xlane.f32.xlu0 %v108_v31  ;;  %100 = vadd.xlane.f32.xlu1 %v99_v28  ;;  %v102_v33 = vsel %vm66_vm0, %v95_v29, 0.0 }
  0xbf   :  { %v98_v32 = vmul.f32 %v487_v30, %v487_v30 }
  0xc1   :  { %v111_v34 = vsel %vm79_vm1, %v98_v32, 0.0 }
  0xc2   :  { %112 = vadd.xlane.f32.xlu1 %v111_v34  ;;  %103 = vadd.xlane.f32.xlu0 %v102_v33 }
 0x143   :  { %v107_v60 = vpop.xlane.xlu1 %106 }
 0x144   :  { %v116_v61 = vmul.f32 0.015625, %v107_v60 }
 0x146   :  { %v121_v62 = vadd.f32 1e-05, %v116_v61 }
 0x147   :  { %v110_v63 = vpop.xlane.xlu0 %109  ;;  %v101_v0 = vpop.xlane.xlu1 %100 }
 0x148   :  { %317 = vrsqrt.f32 %v121_v62  ;;  %v117_v1 = vmul.f32 0.015625, %v110_v63  ;;  %v114_v2 = vmul.f32 0.015625, %v101_v0 }
 0x14a   :  { %v122_v3 = vadd.f32 1e-05, %v117_v1  ;;  %v119_v4 = vadd.f32 1e-05, %v114_v2 }
 0x14b   :  { %v104_v5 = vpop.xlane.xlu0 %103  ;;  %v113_v6 = vpop.xlane.xlu1 %112 }
 0x14c   :  { %319 = vrsqrt.f32 %v122_v3  ;;  %v115_v7 = vmul.f32 0.015625, %v104_v5  ;;  %v118_v8 = vmul.f32 0.015625, %v113_v6 }
 0x14d   :  { %321 = vrsqrt.f32 %v119_v4 }
 0x14e   :  { %v120_v9 = vadd.f32 1e-05, %v115_v7  ;;  %v123_v10 = vadd.f32 1e-05, %v118_v8 }
 0x150   :  { %323 = vrsqrt.f32 %v120_v9 }
 0x151   :  { %325 = vrsqrt.f32 %v123_v10 }
 0x155   :  { %v318_v11 = vpop.eup %317 }
 0x156   :  { %v131_v12 = vmul.f32 %v318_v11, %v469_v14 }
 0x158   :  { %v143_v19 = vmul.f32 %v295_v13, %v131_v12 }
 0x159   :  { %v320_v16 = vpop.eup %319 }
 0x15a   :  { %v322_v17 = vpop.eup %321  ;;  %v132_v18 = vmul.f32 %v320_v16, %v477_v22  ;;  %v155_v27 = vadd.f32 %v296_v20, %v143_v19 }
 0x15b   :  { %v129_v21 = vmul.f32 %v322_v17, %v471_v15 }
 0x15c   :  { %v144_v23 = vmul.f32 %v295_v13, %v132_v18 }
 0x15d   :  { %v324_v25 = vpop.eup %323  ;;  %v141_v14 = vmul.f32 %v295_v13, %v129_v21 }
 0x15e   :  { %v326_v26 = vpop.eup %325  ;;  %v156_v28 = vadd.f32 %v296_v20, %v144_v23  ;;  %v130_v29 = vmul.f32 %v324_v25, %v480_v24  ;;  %v187_v24 = vlaneseq }
 0x15f   :  { %v133_v31 = vmul.f32 %v326_v26, %v487_v30  ;;  %v153_v22 = vadd.f32 %v296_v20, %v141_v14  ;;  %v185_v30 = vld [vmem:[%s526_s4] sm:$0x3]  ;;  %s421_s4 = smov [#allocation8]  }
 0x160   :  { %v159_v32 = vpack.c.bf16 %v156_v28, %v155_v27  ;;  %v142_v33 = vmul.f32 %v295_v13, %v130_v29  ;;  %v188_v38 = vshrl.u32 %v187_v24, 7  ;;  %s282_s13 = sshll.u32 %s421_s4, 4  ;;  %s283_s13 = int_to_ptr.vmem [resolvable:$true] %s282_s13 }
 0x161   :  { %v145_v34 = vmul.f32 %v295_v13, %v133_v31  ;;  %s387_s14 = scalar_lea.vmem %s283_s13, 1280  ;;  %p392_p2 = scmp.lt.s32.totalorder %s283_s13, %s283_s13 }
 0x162   :  { %298 = vmatmul.mubr.msk.bf16.vlgmr.msra.gmra.mxu1 %vm66_vm0, %v159_v32  ;;  %v154_v35 = vadd.f32 %v296_v20, %v142_v33  ;;  %v189_v39 = vsub.s32 0, %v188_v38  ;;  %v193_v40 = vsub.s32 1, %v188_v38  ;;  %p388_p1 = scmp.ne.s32.totalorder %s283_s13, %s387_s14  ;;  %p393_p3 = scmp.lt.s32.totalorder %s387_s14, %s387_s14 }
 0x163   :  { %258 = vmatprep.mubr.bf16.mxu1 %v420_v45  ;;  %v157_v36 = vadd.f32 %v296_v20, %v145_v34 }
 0x164   :  { %v158_v15 = vpack.c.bf16 %v154_v35, %v153_v22  ;;  %v190_v41 = vrot.slane %v185_v30, %v189_v39  ;;  %v194_v42 = vrot.slane %v185_v30, %v193_v40  ;;  %p394_p4 = por %p393_p3, %p392_p2 }
 0x165   :  { %v160_v37 = vpack.c.bf16 %v157_v36, %v157_v36 }
 0x166   :  { %297 = vmatmul.mubr.msk.bf16.vlgmr.msra.gmra.mxu0 %vm66_vm0, %v158_v15  ;;  %p395_p5 = pnand %p394_p4, %p388_p1 }
 0x16a   :  { %299 = vmatmul.mubr.msk.bf16.gmra.mxu1 %vm66_vm0, %v160_v37 }
 0x222   :  { %v250_v43 = vpop.f32.mrf.mxu1 }
 0x223   :  { %v251_v44 = vadd.f32 %v250_v43, %v190_v41 }
 0x224   :  { %v252_v45 = vpop.f32.mrf.mxu1 }
 0x225   :  { %271 = vst [vmem:[#allocation8 + $0x20] sm:$0xff] %v251_v44  ;;  %v253_v46 = vadd.f32 %v252_v45, %v194_v42 }
 0x226   :  { %v240_v47 = vpop.f32.mrf.mxu0  ;;  %v254_v48 = vpop.f32.mrf.mxu1 }
 0x227   :  { %272 = vst.msk [vmem:[#allocation8 + $0x28] sm:$0xff] %vm66_vm0, %v253_v46  ;;  %v241_v49 = vadd.f32 %v240_v47, %v190_v41  ;;  %v255_v50 = vadd.f32 %v254_v48, %v190_v41 }
 0x228   :  { %v242_v51 = vpop.f32.mrf.mxu0  ;;  %v256_v52 = vpop.f32.mrf.mxu1 }
 0x229   :  { %267 = vst [vmem:[#allocation8] sm:$0xff] %v241_v49  ;;  %273 = vst [vmem:[#allocation8 + $0x30] sm:$0xff] %v255_v50  ;;  %v243_v53 = vadd.f32 %v242_v51, %v194_v42  ;;  %v257_v54 = vadd.f32 %v256_v52, %v194_v42 }
 0x22a   :  { %v244_v55 = vpop.f32.mrf.mxu0  ;;  %v260_v56 = vpop.f32.mrf.mxu1 }
 0x22b   :  { %268 = vst.msk [vmem:[#allocation8 + $0x8] sm:$0xff] %vm66_vm0, %v243_v53  ;;  %274 = vst.msk [vmem:[#allocation8 + $0x38] sm:$0xff] %vm66_vm0, %v257_v54  ;;  %v245_v57 = vadd.f32 %v244_v55, %v190_v41  ;;  %v261_v58 = vadd.f32 %v260_v56, %v190_v41 }
 0x22c   :  { %v246_v59 = vpop.f32.mrf.mxu0  ;;  %v262_v60 = vpop.f32.mrf.mxu1 }
 0x22d   :  { %269 = vst [vmem:[#allocation8 + $0x10] sm:$0xff] %v245_v57  ;;  %275 = vst [vmem:[#allocation8 + $0x40] sm:$0x3] %v261_v58  ;;  %v247_v61 = vadd.f32 %v246_v59, %v194_v42  ;;  %v263_v62 = vadd.f32 %v262_v60, %v194_v42 }
 0x22e   :  { %v264_v63 = vpop.f32.mrf.mxu1 }
 0x22f   :  { %270 = vst.msk [vmem:[#allocation8 + $0x18] sm:$0xff] %vm66_vm0, %v247_v61 }
 0x230   :  { %276 = vst.msk [vmem:[#allocation8 + $0x48] sm:$0x3] %vm79_vm1, %v263_v62  ;;  %v265_v0 = vpop.f32.mrf.mxu1 }
 0x231   :  { %398 = shalt.err (!%p395_p5)
}
 0x232   :  { %288 = dma.vmem_to_hbm [thread:$0]  %s283_s13, 1280, %s527_s5, [#allocation4], %s418_s2, %s418_s2, %s419_s9  }
 0x233   :  { %411 = dma.done.wait [#allocation4], 1280  }
 0x234   :  { %412 = vsyncadd [#allocation4], 4294966016 }
 0x235   :  { %292 = vsyncpa [#allocation3], 1 }
 0x236   :  { %293 = vsyncpa [#allocation6], 1 }
 0x237   :  { %294 = vsyncpa [#allocation4], 1 }

</bundles_post_ra>
